<compile_context>
chip_gen: v5e
topology: v5e:2x2
jax: 0.10.0
libtpu: 0.0.40
codegen_flags: <defaults>
</compile_context>

<pallas_src>
import jax
import jax.numpy as jnp
from jax.experimental import pallas as pl
from jax.experimental.pallas import tpu as pltpu

_ROW_ALIGN = 16       # bf16 packs 16 rows per vreg
_MAX_BM = 1024        # per-step batch tile cap (amortizes ~0.35 us step cost)


def _round_up(n, m):
    return ((n + m - 1) // m) * m


def _cdiv(a, b):
    return (a + b - 1) // b


def _batch_tiling(B):
    """Return (bm, b_pad, num_tiles).

    Single tile up to _MAX_BM rows; otherwise an adaptive tile that keeps
    padding waste small and the grid length even (v7x has 2 TensorCores).
    """
    b16 = _round_up(B, _ROW_ALIGN)
    if b16 <= _MAX_BM:
        return b16, b16, 1
    nt = _cdiv(b16, _MAX_BM)
    if nt % 2:
        nt += 1                       # even grid -> both v7x TCs stay busy
    bm = _round_up(_cdiv(B, nt), _ROW_ALIGN)
    return bm, bm * nt, nt


def combined_kernel(x_ref, we_ref, be_ref, w1_ref, b1_ref, w2_ref, b2_ref,
                    o_ref):
    """Fused sigmoid(l2(relu(l1(relu(encoder(x)))))) on one batch tile."""
    x = x_ref[...].astype(jnp.bfloat16)                 # bf16 cast in-kernel

    # Encoder: Linear + ReLU (bf16 MXU operands, f32 accumulate/activation).
    enc = jnp.dot(x, we_ref[...],
                  preferred_element_type=jnp.float32) + be_ref[...]
    enc = jnp.maximum(enc, 0.0)

    # FFN.l1 + ReLU
    h = jnp.dot(enc.astype(jnp.bfloat16), w1_ref[...],
                preferred_element_type=jnp.float32) + b1_ref[...]
    h = jnp.maximum(h, 0.0)

    # FFN.l2 + sigmoid
    y = jnp.dot(h.astype(jnp.bfloat16), w2_ref[...],
                preferred_element_type=jnp.float32) + b2_ref[...]
    o_ref[...] = jax.nn.sigmoid(y).astype(o_ref.dtype)


def combined_forward(x, params):
    """x: (B, input_size) float32 -> (B, output_size) float32."""
    we, be, w1, b1, w2, b2 = params
    B, d_in = x.shape
    h = we.shape[1]
    h2 = w1.shape[1]
    d_out = w2.shape[1]

    bm, b_p, num_tiles = _batch_tiling(B)

    # Only the batch dim is padded (zeros); padded rows are sliced off below.
    x_p = x if b_p == B else jnp.pad(x, ((0, b_p - B), (0, 0)))

    # Weights are tiny: a one-time bf16 cast in the wrapper is essentially free
    # and halves their (already negligible) DMA. Biases stay f32 (post-accum).
    we_b = we.astype(jnp.bfloat16)
    w1_b = w1.astype(jnp.bfloat16)
    w2_b = w2.astype(jnp.bfloat16)

    # Block-resident (constant index map) specs; full-array blocks are legal
    # regardless of (8,128) since they equal the array dims.
    resident = lambda r, c: pl.BlockSpec((r, c), lambda i: (0, 0))

    out_p = pl.pallas_call(
        combined_kernel,
        out_shape=jax.ShapeDtypeStruct((b_p, d_out), jnp.float32),
        grid=(num_tiles,),
        in_specs=[
            pl.BlockSpec((bm, d_in), lambda i: (i, 0)),  # x tile (f32, no lane pad)
            resident(d_in, h),                           # encoder W (bf16)
            resident(1, h),                              # encoder b (f32)
            resident(h, h2),                             # l1 W (bf16)
            resident(1, h2),                             # l1 b (f32)
            resident(h2, d_out),                         # l2 W (bf16)
            resident(1, d_out),                          # l2 b (f32)
        ],
        out_specs=pl.BlockSpec((bm, d_out), lambda i: (i, 0)),
        compiler_params=pltpu.CompilerParams(
            dimension_semantics=("parallel",),
            vmem_limit_bytes=32 * 1024 * 1024),
    )(x_p, we_b, be, w1_b, b1, w2_b, b2)

    return out_p[:B]


def init_params(key, input_size, hidden_size, output_size):
    """Deterministic param init (uniform, like PyTorch's default Linear)."""
    ks = jax.random.split(key, 6)

    def lin(kw, kb, fan_in, fan_out):
        bound = 1.0 / jnp.sqrt(fan_in)
        w = jax.random.uniform(kw, (fan_in, fan_out), jnp.float32,
                               -bound, bound)
        b = jax.random.uniform(kb, (1, fan_out), jnp.float32, -bound, bound)
        return w, b

    we, be = lin(ks[0], ks[1], input_size, hidden_size)          # Encoder
    w1, b1 = lin(ks[2], ks[3], hidden_size, hidden_size // 2)    # FFN.l1
    w2, b2 = lin(ks[4], ks[5], hidden_size // 2, output_size)    # FFN.l2
    return (we, be, w1, b1, w2, b2)


def reference_forward_f32(x, params):
    we, be, w1, b1, w2, b2 = params
    enc = jnp.maximum(x @ we + be, 0.0)
    h = jnp.maximum(enc @ w1 + b1, 0.0)
    return jax.nn.sigmoid(h @ w2 + b2)


def reference_forward_bf16(x, params):
    """Same precision recipe as the kernel (bf16 MXU inputs, f32 accumulate)."""
    we, be, w1, b1, w2, b2 = params
    enc = jnp.maximum(
        jnp.dot(x.astype(jnp.bfloat16), we.astype(jnp.bfloat16),
                preferred_element_type=jnp.float32) + be, 0.0)
    h = jnp.maximum(
        jnp.dot(enc.astype(jnp.bfloat16), w1.astype(jnp.bfloat16),
                preferred_element_type=jnp.float32) + b1, 0.0)
    y = jnp.dot(h.astype(jnp.bfloat16), w2.astype(jnp.bfloat16),
                preferred_element_type=jnp.float32) + b2
    return jax.nn.sigmoid(y)


if __name__ == "__main__":
    # config: input_size=16, hidden_size=32 (-> FFN hidden 16), output_size=8
    input_size, hidden_size, output_size = 16, 32, 8

    key = jax.random.PRNGKey(0)
    kx, kp, kx2 = jax.random.split(key, 3)
    params = init_params(kp, input_size, hidden_size, output_size)

    # Case 1: aligned small batch (single grid step).
    batch = 16
    x = jax.random.normal(kx, (batch, input_size), jnp.float32)
    out = jax.block_until_ready(combined_forward(x, params))
    assert out.shape == (batch, output_size)
    assert jnp.allclose(out, reference_forward_bf16(x, params),
                        atol=1e-4, rtol=1e-4)
    assert jnp.allclose(out, reference_forward_f32(x, params),
                        atol=2e-2, rtol=2e-2)

    # Case 2: unaligned batch (exercises row padding + slice-off).
    batch2 = 13
    x2 = jax.random.normal(kx2, (batch2, input_size), jnp.float32)
    out2 = jax.block_until_ready(combined_forward(x2, params))
    assert out2.shape == (batch2, output_size)
    assert jnp.allclose(out2, reference_forward_bf16(x2, params),
                        atol=1e-4, rtol=1e-4)

    print("KERNEL_OK")
</pallas_src>

<mosaic_0001>
module attributes {stable_mosaic.version = 11 : i64} {
  func.func @combined_kernel(%arg0: i32, %arg1: memref<16x16xf32, #tpu.memory_space<vmem>>, %arg2: memref<16x32xbf16, #tpu.memory_space<vmem>>, %arg3: memref<1x32xf32, #tpu.memory_space<vmem>>, %arg4: memref<32x16xbf16, #tpu.memory_space<vmem>>, %arg5: memref<1x16xf32, #tpu.memory_space<vmem>>, %arg6: memref<16x8xbf16, #tpu.memory_space<vmem>>, %arg7: memref<1x8xf32, #tpu.memory_space<vmem>>, %arg8: memref<16x8xf32, #tpu.memory_space<vmem>>) attributes {dimension_semantics = [#tpu.dimension_semantics<parallel>], iteration_bounds = array<i64: 1>, scalar_prefetch = 0 : i64, scratch_operands = 0 : i64, tpu.core_type = #tpu.core_type<tc>, window_params = [{transform_indices = @transform_0, window_bounds = array<i64: 16, 16>}, {pipeline_mode = #tpu.pipeline_mode<synchronous>, transform_indices = @transform_1, window_bounds = array<i64: 16, 32>}, {pipeline_mode = #tpu.pipeline_mode<synchronous>, transform_indices = @transform_2, window_bounds = array<i64: 1, 32>}, {pipeline_mode = #tpu.pipeline_mode<synchronous>, transform_indices = @transform_3, window_bounds = array<i64: 32, 16>}, {pipeline_mode = #tpu.pipeline_mode<synchronous>, transform_indices = @transform_4, window_bounds = array<i64: 1, 16>}, {pipeline_mode = #tpu.pipeline_mode<synchronous>, transform_indices = @transform_5, window_bounds = array<i64: 16, 8>}, {pipeline_mode = #tpu.pipeline_mode<synchronous>, transform_indices = @transform_6, window_bounds = array<i64: 1, 8>}, {transform_indices = @transform_7, window_bounds = array<i64: 16, 8>}]} {
    %c0 = arith.constant 0 : index
    %c0_0 = arith.constant 0 : index
    %0 = vector.load %arg1[%c0, %c0_0] : memref<16x16xf32, #tpu.memory_space<vmem>>, vector<16x16xf32>
    %1 = arith.truncf %0 : vector<16x16xf32> to vector<16x16xbf16>
    %c0_1 = arith.constant 0 : index
    %c0_2 = arith.constant 0 : index
    %2 = vector.load %arg2[%c0_1, %c0_2] : memref<16x32xbf16, #tpu.memory_space<vmem>>, vector<16x32xbf16>
    %cst = arith.constant dense<0.000000e+00> : vector<16x32xf32>
    %3 = tpu.matmul %1, %2, %cst {dimension_numbers = #tpu.dot_dimension_numbers<[1], [0], [0], [1], [0, 0, 1, 1], [], []>} : vector<16x16xbf16>, vector<16x32xbf16>, vector<16x32xf32> -> vector<16x32xf32>
    %c0_3 = arith.constant 0 : index
    %c0_4 = arith.constant 0 : index
    %4 = vector.load %arg3[%c0_3, %c0_4] : memref<1x32xf32, #tpu.memory_space<vmem>>, vector<1x32xf32>
    %5 = vector.broadcast %4 : vector<1x32xf32> to vector<16x32xf32>
    %6 = arith.addf %3, %5 : vector<16x32xf32>
    %cst_5 = arith.constant 0.000000e+00 : f32
    %7 = vector.broadcast %cst_5 : f32 to vector<16x32xf32>
    %8 = arith.maximumf %6, %7 : vector<16x32xf32>
    %9 = arith.truncf %8 : vector<16x32xf32> to vector<16x32xbf16>
    %c0_6 = arith.constant 0 : index
    %c0_7 = arith.constant 0 : index
    %10 = vector.load %arg4[%c0_6, %c0_7] : memref<32x16xbf16, #tpu.memory_space<vmem>>, vector<32x16xbf16>
    %cst_8 = arith.constant dense<0.000000e+00> : vector<16x16xf32>
    %11 = tpu.matmul %9, %10, %cst_8 {dimension_numbers = #tpu.dot_dimension_numbers<[1], [0], [0], [1], [0, 0, 1, 1], [], []>} : vector<16x32xbf16>, vector<32x16xbf16>, vector<16x16xf32> -> vector<16x16xf32>
    %c0_9 = arith.constant 0 : index
    %c0_10 = arith.constant 0 : index
    %12 = vector.load %arg5[%c0_9, %c0_10] : memref<1x16xf32, #tpu.memory_space<vmem>>, vector<1x16xf32>
    %13 = vector.broadcast %12 : vector<1x16xf32> to vector<16x16xf32>
    %14 = arith.addf %11, %13 : vector<16x16xf32>
    %cst_11 = arith.constant 0.000000e+00 : f32
    %15 = vector.broadcast %cst_11 : f32 to vector<16x16xf32>
    %16 = arith.maximumf %14, %15 : vector<16x16xf32>
    %17 = arith.truncf %16 : vector<16x16xf32> to vector<16x16xbf16>
    %c0_12 = arith.constant 0 : index
    %c0_13 = arith.constant 0 : index
    %18 = vector.load %arg6[%c0_12, %c0_13] : memref<16x8xbf16, #tpu.memory_space<vmem>>, vector<16x8xbf16>
    %cst_14 = arith.constant dense<0.000000e+00> : vector<16x8xf32>
    %19 = tpu.matmul %17, %18, %cst_14 {dimension_numbers = #tpu.dot_dimension_numbers<[1], [0], [0], [1], [0, 0, 1, 1], [], []>} : vector<16x16xbf16>, vector<16x8xbf16>, vector<16x8xf32> -> vector<16x8xf32>
    %c0_15 = arith.constant 0 : index
    %c0_16 = arith.constant 0 : index
    %20 = vector.load %arg7[%c0_15, %c0_16] : memref<1x8xf32, #tpu.memory_space<vmem>>, vector<1x8xf32>
    %21 = vector.broadcast %20 : vector<1x8xf32> to vector<16x8xf32>
    %22 = arith.addf %19, %21 : vector<16x8xf32>
    %23 = arith.negf %22 : vector<16x8xf32>
    %24 = math.exp %23 : vector<16x8xf32>
    %cst_17 = arith.constant 1.000000e+00 : f32
    %25 = vector.broadcast %cst_17 : f32 to vector<16x8xf32>
    %26 = arith.addf %25, %24 : vector<16x8xf32>
    %27 = arith.divf %25, %26 : vector<16x8xf32>
    %c0_18 = arith.constant 0 : index
    %c0_19 = arith.constant 0 : index
    %28 = vector.load %arg8[%c0_18, %c0_19] : memref<16x8xf32, #tpu.memory_space<vmem>>, vector<16x8xf32>
    tpu.vector_store %arg8[%c0_18, %c0_19], %27 {strides = array<i32>} : memref<16x8xf32, #tpu.memory_space<vmem>>, vector<16x8xf32>,
    return
  }
  func.func @transform_0(%arg0: i32) -> (i32, i32) {
    %c0_i32 = arith.constant 0 : i32
    %c0_i32_0 = arith.constant 0 : i32
    return %arg0, %c0_i32 : i32, i32
  }
  func.func @transform_1(%arg0: i32) -> (i32, i32) {
    %c0_i32 = arith.constant 0 : i32
    %c0_i32_0 = arith.constant 0 : i32
    %c0_i32_1 = arith.constant 0 : i32
    return %c0_i32, %c0_i32_0 : i32, i32
  }
  func.func @transform_2(%arg0: i32) -> (i32, i32) {
    %c0_i32 = arith.constant 0 : i32
    %c0_i32_0 = arith.constant 0 : i32
    %c0_i32_1 = arith.constant 0 : i32
    return %c0_i32, %c0_i32_0 : i32, i32
  }
  func.func @transform_3(%arg0: i32) -> (i32, i32) {
    %c0_i32 = arith.constant 0 : i32
    %c0_i32_0 = arith.constant 0 : i32
    %c0_i32_1 = arith.constant 0 : i32
    return %c0_i32, %c0_i32_0 : i32, i32
  }
  func.func @transform_4(%arg0: i32) -> (i32, i32) {
    %c0_i32 = arith.constant 0 : i32
    %c0_i32_0 = arith.constant 0 : i32
    %c0_i32_1 = arith.constant 0 : i32
    return %c0_i32, %c0_i32_0 : i32, i32
  }
  func.func @transform_5(%arg0: i32) -> (i32, i32) {
    %c0_i32 = arith.constant 0 : i32
    %c0_i32_0 = arith.constant 0 : i32
    %c0_i32_1 = arith.constant 0 : i32
    return %c0_i32, %c0_i32_0 : i32, i32
  }
  func.func @transform_6(%arg0: i32) -> (i32, i32) {
    %c0_i32 = arith.constant 0 : i32
    %c0_i32_0 = arith.constant 0 : i32
    %c0_i32_1 = arith.constant 0 : i32
    return %c0_i32, %c0_i32_0 : i32, i32
  }
  func.func @transform_7(%arg0: i32) -> (i32, i32) {
    %c0_i32 = arith.constant 0 : i32
    %c0_i32_0 = arith.constant 0 : i32
    return %arg0, %c0_i32 : i32, i32
  }
}

</mosaic_0001>

<bundles_post_ra>
// kernel: tpu_custom_call.1
= control target key start
LH: loop header
LB: loop body
LE: loop exit
PB: predicated region body
PF: predicated region fallthrough
CT: control target
= control target key end

     0   :  { %vm42_vm0 = vcmask 130048   ;;  %vm83_vm1 = vcmask 261120   ;;  %vm171_vm5 = vcmask 64512   ;;  %s291_s1 = inlined_call_operand.vmem [shape: bf16[16,32], index: 1, kind: input, shape index: {}]   ;;  %s292_s0 = inlined_call_operand.vmem [shape: f32[16,16], index: 0, kind: input, shape index: {}]   ;;  %s293_s2 = inlined_call_operand.vmem [shape: f32[1,32], index: 2, kind: input, shape index: {}]   ;;  %s294_s4 = inlined_call_operand.vmem [shape: f32[1,16], index: 4, kind: input, shape index: {}]   ;;  %s295_s3 = inlined_call_operand.vmem [shape: bf16[32,16], index: 3, kind: input, shape index: {}]   ;;  %s296_s6 = inlined_call_operand.vmem [shape: f32[1,8], index: 6, kind: input, shape index: {}]   ;;  %s297_s5 = inlined_call_operand.vmem [shape: bf16[16,8], index: 5, kind: input, shape index: {}]   ;;  %s298_s7 = inlined_call_operand.vmem [shape: f32[16,8], index: 7, kind: output, shape index: {}]  }
   0x1   :  { %v199_v0 = vld [vmem:[%s291_s1] sm:$0xff]  ;;  %v28_v2 = vld [vmem:[%s292_s0 + $0x8] sm:$0xff] }
   0x2   :  { %v27_v1 = vld [vmem:[%s292_s0] sm:$0xff]  ;;  %53 = vmatpush.bf16.msra.mxu0 %v199_v0  ;;  %v201_v4 = vld [vmem:[%s295_s3 + $0x8] sm:$0xff] }
   0x3   :  { %v29_v3 = vpack.c.bf16 %v28_v2, %v27_v1  ;;  %93 = vmatpush.bf16.msra.mxu1 %v201_v4  ;;  %v200_v5 = vld [vmem:[%s295_s3] sm:$0xff] }
   0x4   :  { %v203_v7 = vld [vmem:[%s293_s2] ss:$0 sm:$0xff] }
   0x5   :  { %182 = vmatmul.msk.bf16.vlgmr.msra.gmra.mxu0 %vm42_vm0, %v29_v3  ;;  %v202_v14 = vld [vmem:[%s297_s5] sm:$0xff] }
   0x6   :  { %126 = vmatpush.bf16.msra.mxu2 %v202_v14  ;;  %v204_v16 = vld [vmem:[%s294_s4] ss:$0 sm:$0xff] }
   0x7   :  { %94 = vmatpush.bf16.msra.mxu1 %v200_v5  ;;  %v205_v23 = vld [vmem:[%s296_s6] ss:$0 sm:$0xff] }
  0x82   :  { %v55_v6 = vpop.f32.mrf.mxu0 }
  0x83   :  { %v56_v8 = vadd.f32 %v203_v7, %v55_v6 }
  0x85   :  { %v60_v11 = vmax.f32 %v56_v8, 0.0 }
  0x8a   :  { %v57_v9 = vpop.f32.mrf.mxu0 }
  0x8b   :  { %v58_v10 = vadd.f32 %v203_v7, %v57_v9 }
  0x8d   :  { %v61_v12 = vmax.f32 %v58_v10, 0.0 }
  0x8f   :  { %v62_v13 = vpack.c.bf16 %v61_v12, %v60_v11 }
  0x91   :  { %191 = vmatmul.msk.bf16.vlgmr.msra.gmra.mxu1 %vm83_vm1, %v62_v13 }
 0x10e   :  { %v96_v15 = vpop.f32.mrf.mxu1 }
 0x10f   :  { %v97_v17 = vadd.f32 %v204_v16, %v96_v15 }
 0x111   :  { %v101_v20 = vmax.f32 %v97_v17, 0.0 }
 0x116   :  { %v98_v18 = vpop.f32.mrf.mxu1 }
 0x117   :  { %v99_v19 = vadd.f32 %v204_v16, %v98_v18 }
 0x119   :  { %v102_v21 = vmax.f32 %v99_v19, 0.0 }
 0x11b   :  { %v103_v22 = vpack.c.bf16 %v102_v21, %v101_v20 }
 0x11d   :  { %196 = vmatmul.msk.bf16.vlgmr.msra.gmra.mxu2 %vm42_vm0, %v103_v22 }
 0x1a0   :  { %v128_v24 = vpop.f32.mrf.mxu2 }
 0x1a1   :  { %v129_v25 = vadd.f32 %v205_v23, %v128_v24 }
 0x1a3   :  { %v197_v26 = vmul.f32 -1.442695, %v129_v25 }
 0x1a5   :  { %206 = vpow2.f32 %v197_v26 }
 0x1a8   :  { %v130_v27 = vpop.f32.mrf.mxu2 }
 0x1a9   :  { %v131_v28 = vadd.f32 %v205_v23, %v130_v27 }
 0x1ab   :  { %v207_v29 = vpop.eup %206  ;;  %v198_v30 = vmul.f32 -1.442695, %v131_v28 }
 0x1ac   :  { %v139_v31 = vadd.f32 1.0, %v207_v29 }
 0x1ad   :  { %208 = vpow2.f32 %v198_v30 }
 0x1ae   :  { %210 = vrcp.f32 %v139_v31  ;;  %v152_v37 = vand.u32 2147483648, %v139_v31  ;;  %v150_v39 = vand.u32 2147483647, %v139_v31  ;;  %vm146_vm3 = vweird.f32 %v139_v31 }
 0x1b0   :  { %v153_v42 = vor.u32 1.1754944e-38, %v152_v37  ;;  %vm151_vm6 = vcmp.eq.f32.partialorder %v150_v39, 8.507059e+37 }
 0x1b3   :  { %v209_v32 = vpop.eup %208 }
 0x1b4   :  { %v211_v33 = vpop.eup %210  ;;  %v140_v34 = vadd.f32 1.0, %v209_v32 }
 0x1b5   :  { %v142_v35 = vmul.f32 %v211_v33, %v139_v31  ;;  %vm147_vm2 = vweird.f32 %v211_v33 }
 0x1b6   :  { %212 = vrcp.f32 %v140_v34  ;;  %vm148_vm4 = vmor %vm146_vm3, %vm147_vm2  ;;  %v167_v47 = vand.u32 2147483648, %v140_v34  ;;  %v165_v49 = vand.u32 2147483647, %v140_v34  ;;  %vm161_vm8 = vweird.f32 %v140_v34 }
 0x1b7   :  { %v143_v36 = vsub.f32 1.0, %v142_v35 }
 0x1b8   :  { %v168_v51 = vor.u32 1.1754944e-38, %v167_v47  ;;  %vm166_vm10 = vcmp.eq.f32.partialorder %v165_v49, 8.507059e+37 }
 0x1b9   :  { %v144_v38 = vmul.f32 %v211_v33, %v143_v36 }
 0x1bb   :  { %v145_v40 = vadd.f32 %v211_v33, %v144_v38 }
 0x1bc   :  { %v213_v41 = vpop.eup %212 }
 0x1bd   :  { %v149_v43 = vsel %vm148_vm4, %v211_v33, %v145_v40  ;;  %v157_v44 = vmul.f32 %v213_v41, %v140_v34  ;;  %vm162_vm7 = vweird.f32 %v213_v41 }
 0x1be   :  { %v154_v45 = vsel %vm151_vm6, %v153_v42, %v149_v43  ;;  %vm163_vm9 = vmor %vm161_vm8, %vm162_vm7 }
 0x1bf   :  { %172 = vst.msk [vmem:[%s298_s7] sm:$0xff] %vm171_vm5, %v154_v45  ;;  %v158_v46 = vsub.f32 1.0, %v157_v44 }
 0x1c1   :  { %v159_v48 = vmul.f32 %v213_v41, %v158_v46 }
 0x1c3   :  { %v160_v50 = vadd.f32 %v213_v41, %v159_v48 }
 0x1c5   :  { %v164_v52 = vsel %vm163_vm9, %v213_v41, %v160_v50 }
 0x1c6   :  { %v169_v53 = vsel %vm166_vm10, %v168_v51, %v164_v52 }
 0x1c7   :  { %173 = vst.msk [vmem:[%s298_s7 + $0x8] sm:$0xff] %vm171_vm5, %v169_v53 }

</bundles_post_ra>
